<compile_context>
chip_gen: v6e
topology: v6e:2x2x1
jax: 0.10.0
libtpu: 0.0.40
codegen_flags: <defaults>
</compile_context>

<pallas_src>
import math
import numpy as np
import jax
import jax.numpy as jnp
from jax.experimental import pallas as pl
from jax.experimental.pallas import tpu as pltpu

# Haar reconstruction filters (pywt.Wavelet('haar').rec_lo / rec_hi),
# hardcoded deterministically — no pywt / no checkpoint load.
_INV_SQRT2 = 1.0 / math.sqrt(2.0)
HAAR_REC_LO = [_INV_SQRT2, _INV_SQRT2]
HAAR_REC_HI = [_INV_SQRT2, -_INV_SQRT2]

_PAD_MODE = {'constant': 'constant', 'reflect': 'reflect',
             'replicate': 'edge', 'circular': 'wrap'}


def _down_matrix(filt, in_len, out_len):
    """M[o, 2*o + k] = filt[k]  -> stride-2 cross-correlation as a matmul."""
    K = len(filt)
    M = np.zeros((out_len, in_len), np.float32)
    for o in range(out_len):
        M[o, 2 * o:2 * o + K] = filt
    return M


def _choose_cb(bc, win):
    """Largest divisor of B*C that lane-packs without exploding the
    block-diagonal matrix, while keeping >=2 grid blocks (v7x megacore)."""
    cap = max(1, 512 // max(win, 1))
    best = 1
    for cb in range(1, bc + 1):
        if bc % cb:
            continue
        if cb > cap:
            break
        if bc >= 2 and bc // cb < 2:
            continue
        best = cb
    return best


def _choose_dt(do, hin, cw, elem_bytes=4, budget=2 << 20):
    """Largest divisor of Do keeping the (2*Dt, Hin, CW) input block <= ~2MiB
    (double-buffered blocks stay well inside scoped VMEM, incl. v7x 64MiB)."""
    best = 1
    for dt in range(1, do + 1):
        if do % dt:
            continue
        if 2 * dt * hin * cw * elem_bytes <= budget:
            best = dt
    return best


def _make_kernel(Dt, Hin, CW, Ho, CWO):
    def kernel(x_ref, mw_ref, mh_ref, o_ref):
        # x_ref : (1, 2*Dt, Hin, CW)   CW = CB*Win  (channels packed in lanes)
        # mw_ref: (CW, CWO)            block-diag stride-2 W matrices (lo|hi cols)
        # mh_ref: (2*Ho, Hin)          stacked stride-2 H matrices (pre-scaled)
        # o_ref : (1, 2, Dt, 2*Ho, CWO)  lane-dense fused band slab
        x = x_ref[0].astype(jnp.float32)                 # (2*Dt, Hin, CW)
        xr = x.reshape(Dt, 2, Hin, CW)
        a = xr[:, 0]                                     # even depth slices
        b = xr[:, 1]                                     # odd depth slices
        # D-axis haar combine: lo = a + b, hi = a - b (1/sqrt2 folded into mh)
        z = jnp.concatenate([a + b, a - b], axis=0)      # (2*Dt, Hin, CW), e-major
        # W contraction: one tall MXU matmul, lane-dense result
        t1 = jnp.dot(z.reshape(2 * Dt * Hin, CW), mw_ref[...],
                     preferred_element_type=jnp.float32)  # (2*Dt*Hin, CWO)
        t1 = t1.reshape(2 * Dt, Hin, CWO)
        # H contraction: one batched matmul with the fused lo|hi matrix
        mh = jnp.broadcast_to(mh_ref[...][None], (2 * Dt, 2 * Ho, Hin))
        out = jax.lax.dot_general(
            mh, t1,
            dimension_numbers=(((2,), (1,)), ((0,), (0,))),
            preferred_element_type=jnp.float32)           # (2*Dt, 2*Ho, CWO)
        o_ref[0] = out.reshape(2, Dt, 2 * Ho, CWO).astype(o_ref.dtype)

    return kernel


def dwt_3d(x, pad_type='replicate', wavename='haar'):
    """Pallas implementation of DWT_3D.forward (module defaults: depthwise
    groups=C, out_channels=C, stride=2, trainable=False, haar)."""
    assert wavename == 'haar'
    fl, fh = HAAR_REC_LO, HAAR_REC_HI
    K = len(fl)
    B, C, D, H, W = x.shape
    # pad sizes exactly as in the module (K even -> K//2 - 1, else K//2)
    p = K // 2 - 1 if K % 2 == 0 else K // 2
    if p > 0:
        x = jnp.pad(x, ((0, 0), (0, 0), (p, p), (p, p), (p, p)),
                    mode=_PAD_MODE[pad_type])
    Dp, Hp, Wp = D + 2 * p, H + 2 * p, W + 2 * p
    Do, Ho, Wo = (Dp - K) // 2 + 1, (Hp - K) // 2 + 1, (Wp - K) // 2 + 1
    # For haar (K=2, stride 2) only the first 2*Do/2*Ho/2*Wo samples are read.
    Din, Hin, Win = 2 * Do, 2 * Ho, 2 * Wo
    x = x[:, :, :Din, :Hin, :Win]

    BC = B * C
    CB = _choose_cb(BC, Win)          # channels packed into lanes per block
    NB = BC // CB                     # grid blocks along batch*channel
    CW = CB * Win                     # packed lane width (input)
    CWO = CB * 2 * Wo                 # packed lane width (output, lo|hi)

    Dt = _choose_dt(Do, Hin, CW, np.dtype(x.dtype).itemsize)
    nD = Do // Dt

    # lane-pack CB channels: (NB, Din, Hin, CB*Win), lane index = c*Win + w
    xk = x.reshape(NB, CB, Din, Hin, Win)
    xk = jnp.transpose(xk, (0, 2, 3, 1, 4)).reshape(NB, Din, Hin, CW)

    # fused lo|hi stride-2 band matrices
    mw_single = np.concatenate([_down_matrix(fl, Win, Wo).T,
                                _down_matrix(fh, Win, Wo).T], axis=1)   # (Win, 2Wo)
    mw_bd = np.kron(np.eye(CB, dtype=np.float32), mw_single)            # (CW, CWO)
    mh = np.concatenate([_down_matrix(fl, Hin, Ho),
                         _down_matrix(fh, Hin, Ho)], axis=0) * _INV_SQRT2  # (2Ho, Hin)

    elem = np.dtype(x.dtype).itemsize
    flops_per_blk = (2 * (2 * Dt * Hin) * CW * CWO          # W matmul
                     + 2 * (2 * Dt) * (2 * Ho) * Hin * CWO  # H matmul
                     + 2 * Dt * Hin * CW * 2)               # D add/sub
    bytes_accessed = (xk.size * elem
                      + NB * 2 * Do * 2 * Ho * CWO * elem
                      + (mw_bd.size + mh.size) * 4 * NB * nD)

    out = pl.pallas_call(
        _make_kernel(Dt, Hin, CW, Ho, CWO),
        out_shape=jax.ShapeDtypeStruct((NB, 2, Do, 2 * Ho, CWO), x.dtype),
        grid=(NB, nD),
        in_specs=[
            pl.BlockSpec((1, 2 * Dt, Hin, CW), lambda nb, db: (nb, db, 0, 0)),
            pl.BlockSpec((CW, CWO), lambda nb, db: (0, 0)),
            pl.BlockSpec((2 * Ho, Hin), lambda nb, db: (0, 0)),
        ],
        out_specs=pl.BlockSpec((1, 2, Dt, 2 * Ho, CWO),
                               lambda nb, db: (nb, 0, db, 0, 0)),
        compiler_params=pltpu.CompilerParams(
            dimension_semantics=("parallel", "parallel"),
            vmem_limit_bytes=32 * 1024 * 1024),
        cost_estimate=pl.CostEstimate(flops=int(flops_per_blk * NB * nD),
                                      transcendentals=0,
                                      bytes_accessed=int(bytes_accessed)),
    )(xk, jnp.asarray(mw_bd), jnp.asarray(mh))

    # unpack lane-dense slab into the 8 sub-bands (layout plumbing in XLA):
    # dims (nb, e, d, g, ho, c, f, wo) -> (b, c, band = 4e+2g+f, d, ho, wo)
    out = out.reshape(NB, 2, Do, 2, Ho, CB, 2, Wo)
    out = jnp.transpose(out, (0, 5, 1, 3, 6, 2, 4, 7))
    out = out.reshape(B, C, 8, Do, Ho, Wo)
    # Same 8-tuple order as the PyTorch module:
    # (LLL, LLH, LHL, LHH, HLL, HLH, HHL, HHH)
    return tuple(out[:, :, i] for i in range(8))


def dwt_3d_ref(x, pad_type='replicate'):
    """Pure-JAX reference (direct strided correlation), for verification."""
    fl, fh = HAAR_REC_LO, HAAR_REC_HI
    K = len(fl)
    B, C, D, H, W = x.shape
    p = K // 2 - 1 if K % 2 == 0 else K // 2
    xp = jnp.pad(x, ((0, 0), (0, 0), (p, p), (p, p), (p, p)),
                 mode=_PAD_MODE[pad_type]) if p > 0 else x
    Dp, Hp, Wp = D + 2 * p, H + 2 * p, W + 2 * p
    Do, Ho, Wo = (Dp - K) // 2 + 1, (Hp - K) // 2 + 1, (Wp - K) // 2 + 1
    bands = []
    for fdv in (fl, fh):
        for fhv in (fl, fh):
            for fwv in (fl, fh):
                acc = jnp.zeros((B, C, Do, Ho, Wo), x.dtype)
                for kd in range(K):
                    for kh in range(K):
                        for kw in range(K):
                            acc = acc + (fdv[kd] * fhv[kh] * fwv[kw]) * \
                                xp[:, :, kd:kd + 2 * Do:2,
                                         kh:kh + 2 * Ho:2,
                                         kw:kw + 2 * Wo:2]
                bands.append(acc)
    return tuple(bands)


if __name__ == "__main__":
    key = jax.random.PRNGKey(0)
    # small NCDHW input: batch=2, channels=4, D=8, H=W=16
    x = jax.random.normal(key, (2, 4, 8, 16, 16), dtype=jnp.float32)

    outs = dwt_3d(x)
    outs = jax.block_until_ready(outs)

    refs = dwt_3d_ref(x)
    assert len(outs) == 8
    for o, r in zip(outs, refs):
        assert o.shape == r.shape == (2, 4, 4, 8, 8)
        np.testing.assert_allclose(np.asarray(o), np.asarray(r),
                                   atol=1e-5, rtol=1e-5)
    print("KERNEL_OK")
</pallas_src>

<mosaic_0001>
module attributes {stable_mosaic.version = 11 : i64} {
  func.func @kernel(%arg0: i32, %arg1: i32, %arg2: memref<1x8x16x64xf32, #tpu.memory_space<vmem>>, %arg3: memref<64x64xf32, #tpu.memory_space<vmem>>, %arg4: memref<16x16xf32, #tpu.memory_space<vmem>>, %arg5: memref<1x2x4x16x64xf32, #tpu.memory_space<vmem>>) attributes {dimension_semantics = [#tpu.dimension_semantics<parallel>, #tpu.dimension_semantics<parallel>], iteration_bounds = array<i64: 2, 1>, scalar_prefetch = 0 : i64, scratch_operands = 0 : i64, tpu.core_type = #tpu.core_type<tc>, window_params = [{transform_indices = @transform_0, window_bounds = array<i64: 1, 8, 16, 64>}, {pipeline_mode = #tpu.pipeline_mode<synchronous>, transform_indices = @transform_1, window_bounds = array<i64: 64, 64>}, {pipeline_mode = #tpu.pipeline_mode<synchronous>, transform_indices = @transform_2, window_bounds = array<i64: 16, 16>}, {transform_indices = @transform_3, window_bounds = array<i64: 1, 2, 4, 16, 64>}]} {
    %c0 = arith.constant 0 : index
    %c0_0 = arith.constant 0 : index
    %c0_1 = arith.constant 0 : index
    %c0_2 = arith.constant 0 : index
    %0 = vector.load %arg2[%c0, %c0_0, %c0_1, %c0_2] : memref<1x8x16x64xf32, #tpu.memory_space<vmem>>, vector<1x8x16x64xf32>
    %1 = vector.shape_cast %0 : vector<1x8x16x64xf32> to vector<8x16x64xf32>
    %2 = vector.shape_cast %1 : vector<8x16x64xf32> to vector<4x2x16x64xf32>
    %3 = vector.extract_strided_slice %2 {offsets = [0, 0, 0, 0], sizes = [4, 1, 16, 64], strides = [1, 1, 1, 1]} : vector<4x2x16x64xf32> to vector<4x1x16x64xf32>
    %4 = vector.shape_cast %3 : vector<4x1x16x64xf32> to vector<4x16x64xf32>
    %5 = vector.extract_strided_slice %2 {offsets = [0, 1, 0, 0], sizes = [4, 1, 16, 64], strides = [1, 1, 1, 1]} : vector<4x2x16x64xf32> to vector<4x1x16x64xf32>
    %6 = vector.shape_cast %5 : vector<4x1x16x64xf32> to vector<4x16x64xf32>
    %7 = arith.addf %4, %6 : vector<4x16x64xf32>
    %8 = arith.subf %4, %6 : vector<4x16x64xf32>
    %9 = tpu.concatenate %7, %8 in 0 : vector<4x16x64xf32>, vector<4x16x64xf32> -> vector<8x16x64xf32>
    %10 = vector.shape_cast %9 : vector<8x16x64xf32> to vector<128x64xf32>
    %c0_3 = arith.constant 0 : index
    %c0_4 = arith.constant 0 : index
    %11 = vector.load %arg3[%c0_3, %c0_4] : memref<64x64xf32, #tpu.memory_space<vmem>>, vector<64x64xf32>
    %cst = arith.constant dense<0.000000e+00> : vector<128x64xf32>
    %12 = tpu.matmul %10, %11, %cst {dimension_numbers = #tpu.dot_dimension_numbers<[1], [0], [0], [1], [0, 0, 1, 1], [], []>} : vector<128x64xf32>, vector<64x64xf32>, vector<128x64xf32> -> vector<128x64xf32>
    %13 = vector.shape_cast %12 : vector<128x64xf32> to vector<8x16x64xf32>
    %c0_5 = arith.constant 0 : index
    %c0_6 = arith.constant 0 : index
    %14 = vector.load %arg4[%c0_5, %c0_6] : memref<16x16xf32, #tpu.memory_space<vmem>>, vector<16x16xf32>
    %15 = vector.shape_cast %14 : vector<16x16xf32> to vector<1x16x16xf32>
    %16 = vector.shape_cast %15 : vector<1x16x16xf32> to vector<1x16x16xf32>
    %17 = vector.broadcast %16 : vector<1x16x16xf32> to vector<8x16x16xf32>
    %cst_7 = arith.constant dense<0.000000e+00> : vector<8x16x64xf32>
    %18 = tpu.matmul %17, %13, %cst_7 {dimension_numbers = #tpu.dot_dimension_numbers<[2], [1], [1], [2], [0, 0, 0, 1, 1, 2], [0], [0]>} : vector<8x16x16xf32>, vector<8x16x64xf32>, vector<8x16x64xf32> -> vector<8x16x64xf32>
    %19 = vector.shape_cast %18 : vector<8x16x64xf32> to vector<2x4x16x64xf32>
    %c0_8 = arith.constant 0 : index
    %c0_9 = arith.constant 0 : index
    %c0_10 = arith.constant 0 : index
    %c0_11 = arith.constant 0 : index
    %c0_12 = arith.constant 0 : index
    %20 = vector.load %arg5[%c0_8, %c0_9, %c0_10, %c0_11, %c0_12] : memref<1x2x4x16x64xf32, #tpu.memory_space<vmem>>, vector<1x2x4x16x64xf32>
    %21 = vector.shape_cast %20 : vector<1x2x4x16x64xf32> to vector<2x4x16x64xf32>
    %22 = vector.shape_cast %19 : vector<2x4x16x64xf32> to vector<1x2x4x16x64xf32>
    tpu.vector_store %arg5[%c0_8, %c0_9, %c0_10, %c0_11, %c0_12], %22 {strides = array<i32>} : memref<1x2x4x16x64xf32, #tpu.memory_space<vmem>>, vector<1x2x4x16x64xf32>,
    return
  }
  func.func @transform_0(%arg0: i32, %arg1: i32) -> (i32, i32, i32, i32) {
    %c0_i32 = arith.constant 0 : i32
    %c0_i32_0 = arith.constant 0 : i32
    %c0_i32_1 = arith.constant 0 : i32
    return %arg0, %arg1, %c0_i32, %c0_i32_0 : i32, i32, i32, i32
  }
  func.func @transform_1(%arg0: i32, %arg1: i32) -> (i32, i32) {
    %c0_i32 = arith.constant 0 : i32
    %c0_i32_0 = arith.constant 0 : i32
    %c0_i32_1 = arith.constant 0 : i32
    return %c0_i32, %c0_i32_0 : i32, i32
  }
  func.func @transform_2(%arg0: i32, %arg1: i32) -> (i32, i32) {
    %c0_i32 = arith.constant 0 : i32
    %c0_i32_0 = arith.constant 0 : i32
    %c0_i32_1 = arith.constant 0 : i32
    return %c0_i32, %c0_i32_0 : i32, i32
  }
  func.func @transform_3(%arg0: i32, %arg1: i32) -> (i32, i32, i32, i32, i32) {
    %c0_i32 = arith.constant 0 : i32
    %c0_i32_0 = arith.constant 0 : i32
    %c0_i32_1 = arith.constant 0 : i32
    %c0_i32_2 = arith.constant 0 : i32
    return %arg0, %c0_i32, %arg1, %c0_i32_0, %c0_i32_1 : i32, i32, i32, i32, i32
  }
}

</mosaic_0001>

<bundles_post_ra>
// kernel: tpu_custom_call.1
= control target key start
LH: loop header
LB: loop body
LE: loop exit
PB: predicated region body
PF: predicated region fallthrough
CT: control target
= control target key end

     0   :  { %8 = vsyncpa [#allocation3], 0  ;;  %s2003_s0 = inlined_call_operand.hbm [shape: f32[2,8,16,64], index: 0, kind: input, shape index: {}]   ;;  %s2004_s1 = inlined_call_operand.hbm [shape: f32[64,64], index: 1, kind: input, shape index: {}]   ;;  %s2005_s2 = inlined_call_operand.hbm [shape: f32[16,16], index: 2, kind: input, shape index: {}]   ;;  %s2006_s3 = inlined_call_operand.hbm [shape: f32[2,2,4,16,64], index: 3, kind: output, shape index: {}]  }
   0x1   :  { %10 = vsyncpa [#allocation3 + $0x1], 0 }
   0x2   :  { %11 = vsyncpa [#allocation6], 0 }
   0x3   :  { %12 = vsyncpa [#allocation4], 0 }
   0x4   :  { %14 = vsyncpa [#allocation4 + $0x1], 0  ;;  %s1707_s12 = smov 0   ;;  %s1709_s13 = smov 0  }
   0x5   :  { %s1711_s14 = smov 0   ;;  %s1713_s15 = smov 0  }
   0x6   :  { %s1715_s16 = smov 0   ;;  %s1717_s17 = smov 0  }
   0x7 LB: > { %s1221_s18 = sadd.s32 4294967295, %s1677_s17   ;;  %s1222_s19 = sadd.s32 4294967294, %s1677_s17   ;;  %s1677_s17 = sphi %s1717_s17, %s20_s17   ;;  %s1673_s16 = sphi %s1715_s16, %s2023_s16   ;;  %s1669_s15 = sphi %s1713_s15, %s2022_s15   ;;  %s1665_s14 = sphi %s1711_s14, %s2021_s14   ;;  %s1661_s13 = sphi %s1709_s13, %s2020_s13   ;;  %s1657_s12 = sphi %s1707_s12, %s2019_s12  }
   0x8   : > { %p54_p0 = scmp.ne.s32.totalorder %s1661_s13, %s1657_s12  ;;  %p1741_p1 = scmp.eq.s32.totalorder %s1221_s18, 0 }
   0x9   : > { %p1745_p2 = scmp.eq.s32.totalorder %s1221_s18, 1  ;;  %p128_p3 = scmp.eq.s32.totalorder %s1222_s19, 1 }
   0xa   : > { %p1751_p4 = por %p1741_p1, %p54_p0  ;;  %p1223_p5 = scmp.ge.s32.totalorder %s1677_s17, 1 }
   0xb   : > { %p1756_p6 = por %p128_p3, %p54_p0  ;;  %p135_p7 = scmp.lt.s32.totalorder %s1677_s17, 3 }
   0xc   : > { %s1679_s25 = smov [#allocation5]   ;;  %s1680_s28 = smov [#allocation7]  }
   0xd   : > { %s2011_s23 = scalar_select %p1756_p6, 1, 0 }
   0xe   : > { %p1761_p8 = pnand %p1223_p5, %p135_p7  ;;  %s147_s26 = sshll.u32 %s1679_s25, 4  ;;  %s148_s26 = int_to_ptr.vmem [resolvable:$true] %s147_s26 }
   0xf   : > { %s160_s29 = sshll.u32 %s1680_s28, 4  ;;  %s1524_s30 = scalar_lea.vmem %s148_s26, 1024  ;;  %s161_s29 = int_to_ptr.vmem [resolvable:$true] %s160_s29 }
  0x10   : > { %p1438_p9 = pneg %p1761_p8  ;;  %p1525_p13 = scmp.ne.s32.totalorder %s148_s26, %s1524_s30 }
  0x11   : > { %p1532_p5 = scmp.lt.s32.totalorder %s148_s26, %s148_s26  ;;  %p1533_p7 = scmp.lt.s32.totalorder %s1524_s30, %s1524_s30 }
  0x12   : > { %p1770_p11 = pnand %p1438_p9, %p1741_p1 }
  0x13   : > { %p1534_p10 = por %p1533_p7, %p1532_p5 }
  0x14   : > { %p1515_p12 = pneg %p1770_p11 }
  0x16   : > { %p1527_p0 = pnand %p1525_p13, %p1515_p12 }
  0x18   : > { %p1528_p3 = pneg %p1527_p0 }
  0x1a   : > { %p1535_p9 = pnand %p1534_p10, %p1528_p3 }
  0x1c   : > { %1538 = shalt.err (!%p1535_p9)
}
  0x1d   : > { %s2007_s4 = smov 128   ;;  %s1682_s5 = smov 8  }
  0x1e   : > { %1441 = dma.hbm_to_vmem [thread:$0]  (!%p1770_p11), %s2004_s1, 1024, %s148_s26, [#allocation6], %s2007_s4, %s2007_s4, %s1682_s5  }
  0x1f   : > { %s1550_s8 = scalar_lea.vmem %s161_s29, 256  ;;  %p1558_p10 = scmp.lt.s32.totalorder %s161_s29, %s161_s29 }
  0x20   : > { %p1551_p13 = scmp.ne.s32.totalorder %s161_s29, %s1550_s8  ;;  %p1559_p3 = scmp.lt.s32.totalorder %s1550_s8, %s1550_s8 }
  0x22   : > { %p1553_p0 = pnand %p1551_p13, %p1515_p12  ;;  %p1560_p7 = por %p1559_p3, %p1558_p10 }
  0x24   : > { %p1554_p5 = pneg %p1553_p0 }
  0x26   : > { %p1561_p9 = pnand %p1560_p7, %p1554_p5 }
  0x28   : > { %1564 = shalt.err (!%p1561_p9)
}
  0x29   : > { %1444 = dma.hbm_to_vmem [thread:$0]  (!%p1770_p11), %s2005_s2, 256, %s161_s29, [#allocation6], %s2007_s4, %s2007_s4, %s1682_s5  }
  0x2a   : > { %s32_s11 = sadd.s32 1, %s1673_s16  ;;  %s41_s18 = sadd.s32 1, %s1665_s14 }
  0x2b   : > { %p34_p12 = scmp.ge.s32.totalorder %s32_s11, 2  ;;  %p48_p13 = scmp.ne.s32.totalorder %s1665_s14, %s1661_s13 }
  0x2c   : > { %p49_p0 = scmp.eq.s32.totalorder %s1677_s17, 0  ;;  %p1455_p5 = scmp.lt.s32.totalorder %s1677_s17, 2 }
  0x2d   : > { %s2025_s11 = smov (%p34_p12, %s32_s11), 0  ;;  %p1808_p3 = por %p1745_p2, %p48_p13 }
  0x2e   : > { %p50_p10 = por %p49_p0, %p48_p13  ;;  %s36_s25 = ssub.s32 %s1673_s16, %s2025_s11 }
  0x2f   : > { %s174_s26 = sand.u32 1, %s1665_s14   ;;  %p39_p7 = scmp.eq.s32.totalorder %s36_s25, 0 }
  0x30   : > { %s1227_s27 = sshll.u32 %s174_s26, 7  ;;  %s1272_s28 = sshll.u32 %s1673_s16, 11 }
  0x31   : > { %s1817_s29 = scalar_select %p39_p7, %s1665_s14, %s41_s18  }
  0x32   : > { %s187_s7 = scalar_lea.hbm %s2003_s0, %s1272_s28  ;;  %s178_s8 = scalar_lea.vmem [#allocation2], %s1227_s27 }
  0x33   : > { %s188_s9 = sshll.u32 %s178_s8, 4  ;;  %p1824_p11 = pnand %p1455_p5, %p50_p10  ;;  %s189_s9 = int_to_ptr.vmem [resolvable:$true] %s188_s9 }
  0x34   : > { %s175_s10 = scalar_lea.sflag [#allocation3], %s174_s26  ;;  %s1578_s25 = scalar_lea.vmem %s189_s9, 2048 }
  0x35   : > { %p1567_p2 = pneg %p1824_p11  ;;  %p1579_p9 = scmp.ne.s32.totalorder %s189_s9, %s1578_s25 }
  0x36   : > { %s1683_s18 = smov [#allocation2]  }
  0x37   : > { %p1581_p12 = pnand %p1579_p9, %p1567_p2  ;;  %s1583_s4 = sshll.u32 %s1683_s18, 4  ;;  %s1584_s4 = int_to_ptr.vmem [resolvable:$false] %s1583_s4 }
  0x38   : > { %s1585_s28 = scalar_lea.vmem %s1584_s4, 4096  ;;  %p1586_p0 = scmp.lt.s32.totalorder %s189_s9, %s1584_s4 }
  0x39   : > { %p1582_p13 = pneg %p1581_p12  ;;  %p1587_p7 = scmp.lt.s32.totalorder %s1585_s28, %s1578_s25 }
  0x3b   : > { %p1588_p6 = por %p1587_p7, %p1586_p0 }
  0x3d   : > { %p1589_p5 = pnand %p1588_p6, %p1582_p13 }
  0x3f   : > { %1592 = shalt.err (!%p1589_p5)
}
  0x40   : > { %s2016_s27 = smov 128   ;;  %200 = sbr.rel (%p1761_p8) target bundleno = 523 (0x20b), region = 32 }
  0x41   : > { %1448 = dma.hbm_to_vmem [thread:$0]  (!%p1824_p11), %s187_s7, 2048, %s189_s9, %s175_s10, %s2016_s27, %s2016_s27, %s1682_s5  }
  0x42   : > { %s1838_s26 = sand.u32 (!%p1761_p8), 1, %s1661_s13  }
  0x43   : > { %s1231_s4 = sshll.u32 (!%p1761_p8), %s1838_s26, 7  ;;  %s203_s30 = scalar_lea.sflag (!%p1761_p8), [#allocation3], %s1838_s26 }
  0x44   : > { %s1844_s6 = scalar_lea.vmem (!%p1761_p8), [#allocation2], %s1231_s4 }
  0x45   : > { %1644 = dma.done.wait (%p1751_p4), %s203_s30, 2048  }
  0x46   : > { %1646 = vsyncadd (%p1751_p4), %s203_s30, 4294965248 }
  0x47   : > { %1648 = dma.done.wait (%p1741_p1), [#allocation6], 1280  }
  0x48   : > { %1650 = vsyncadd (%p1741_p1), [#allocation6], 4294966016  ;;  %v278_v0 = vld [vmem:[#allocation5 + $0x38] sm:$0xff]  ;;  %v277_v1 = vld [vmem:[#allocation5 + $0x30] sm:$0xff]  ;;  %vm279_vm0 = vcmask 523264   ;;  %vm475_vm1 = vcmask 130048  }
  0x49   : > { %1330 = vmatprep.subr.mxu0 %v278_v0  ;;  %v276_v2 = vld [vmem:[#allocation5 + $0x28] sm:$0xff]  ;;  %v239_v3 = vld [vmem:[%s1844_s6] sm:$0xff]  ;;  %v241_v4 = vld [vmem:[%s1844_s6 + $0x10] sm:$0xff]  ;;  %s1914_s20 = scalar_lea.vmem [#allocation8], %s1231_s4  ;;  %s1273_s22 = sshll.u32 %s1669_s15, 11 }
  0x4a   : > { %1331 = vmatpush3.msra.mxu0 %v278_v0  ;;  %v275_v5 = vld [vmem:[#allocation5 + $0x20] sm:$0xff]  ;;  %v255_v6 = vadd.f32 %v241_v4, %v239_v3  ;;  %v274_v7 = vld [vmem:[#allocation5 + $0x18] sm:$0xff]  ;;  %v273_v8 = vld [vmem:[#allocation5 + $0x10] sm:$0xff]  ;;  %v263_v32 = vsub.f32 %v239_v3, %v241_v4  ;;  %s1115_s24 = sshll.u32 %s1914_s20, 4  ;;  %s1949_s8 = scalar_lea.hbm %s2006_s3, %s1273_s22  ;;  %s1951_s24 = int_to_ptr.vmem [resolvable:$true] %s1115_s24 }
  0x4b   : > { %1332 = vmatprep.subr.mxu0 %v277_v1  ;;  %v272_v9 = vld [vmem:[#allocation5 + $0x8] sm:$0xff]  ;;  %v242_v11 = vld [vmem:[%s1844_s6 + $0x18] sm:$0xff]  ;;  %v243_v12 = vld [vmem:[%s1844_s6 + $0x20] sm:$0xff]  ;;  %s1099_s15 = scalar_lea.sflag [#allocation4], %s1838_s26  ;;  %s1593_s9 = scalar_lea.vmem %s1951_s24, 2048 }
  0x4c   : > { %1333 = vmatpush3.msra.mxu0 %v277_v1  ;;  %1346 = vmatprep.mubr.msk.f32.mxu0 %vm279_vm0, %v255_v6  ;;  %v240_v10 = vld [vmem:[%s1844_s6 + $0x8] sm:$0xff]  ;;  %v245_v13 = vld [vmem:[%s1844_s6 + $0x30] sm:$0xff]  ;;  %v271_v14 = vld [vmem:[#allocation5] sm:$0xff]  ;;  %p1594_p1 = scmp.ne.s32.totalorder %s1951_s24, %s1593_s9  ;;  %s1684_s21 = smov [#allocation8]  }
  0x4d   : > { %1334 = vmatprep.subr.mxu0 %v276_v2  ;;  %v256_v15 = vadd.f32 %v242_v11, %v240_v10  ;;  %v257_v16 = vadd.f32 %v245_v13, %v243_v12  ;;  %v244_v17 = vld [vmem:[%s1844_s6 + $0x28] sm:$0xff]  ;;  %v246_v18 = vld [vmem:[%s1844_s6 + $0x38] sm:$0xff]  ;;  %v247_v19 = vld [vmem:[%s1844_s6 + $0x40] sm:$0xff]  ;;  %v264_v33 = vsub.f32 %v240_v10, %v242_v11  ;;  %v265_v34 = vsub.f32 %v243_v12, %v245_v13  ;;  %s1597_s10 = sshll.u32 %s1684_s21, 4  ;;  %s1598_s10 = int_to_ptr.vmem [resolvable:$false] %s1597_s10 }
  0x4e   : > { %1335 = vmatpush3.msra.mxu0 %v276_v2  ;;  %v249_v20 = vld [vmem:[%s1844_s6 + $0x50] sm:$0xff]  ;;  %v258_v21 = vadd.f32 %v246_v18, %v244_v17  ;;  %v248_v23 = vld [vmem:[%s1844_s6 + $0x48] sm:$0xff]  ;;  %v250_v24 = vld [vmem:[%s1844_s6 + $0x58] sm:$0xff]  ;;  %v266_v35 = vsub.f32 %v244_v17, %v246_v18  ;;  %p1595_p4 = pnand %p1594_p1, %p1808_p3  ;;  %s1599_s25 = scalar_lea.vmem %s1598_s10, 4096 }
  0x4f   : > { %1336 = vmatprep.subr.mxu0 %v275_v5  ;;  %v259_v22 = vadd.f32 %v249_v20, %v247_v19  ;;  %v251_v25 = vld [vmem:[%s1844_s6 + $0x60] sm:$0xff]  ;;  %v253_v26 = vld [vmem:[%s1844_s6 + $0x70] sm:$0xff]  ;;  %v260_v27 = vadd.f32 %v250_v24, %v248_v23  ;;  %v252_v29 = vld [vmem:[%s1844_s6 + $0x68] sm:$0xff]  ;;  %v267_v36 = vsub.f32 %v247_v19, %v249_v20  ;;  %v268_v37 = vsub.f32 %v248_v23, %v250_v24  ;;  %p1600_p8 = scmp.lt.s32.totalorder %s1951_s24, %s1598_s10  ;;  %p1601_p10 = scmp.lt.s32.totalorder %s1599_s25, %s1593_s9 }
  0x50   : > { %1337 = vmatpush3.msra.mxu0 %v275_v5  ;;  %v261_v28 = vadd.f32 %v253_v26, %v251_v25  ;;  %v254_v30 = vld [vmem:[%s1844_s6 + $0x78] sm:$0xff]  ;;  %v269_v38 = vsub.f32 %v251_v25, %v253_v26  ;;  %v1886_v40 = vld [vmem:[#allocation7] sm:$0xff]  ;;  %v474_v43 = vld [vmem:[#allocation7 + $0x8] sm:$0xff]  ;;  %p1596_p6 = pneg %p1595_p4 }
  0x51   : > { %1338 = vmatprep.subr.mxu0 %v274_v7  ;;  %v262_v31 = vadd.f32 %v254_v30, %v252_v29  ;;  %v270_v39 = vsub.f32 %v252_v29, %v254_v30  ;;  %1374 = vmatprep.mubr.msk.f32.mxu1 %vm475_vm1, %v1886_v40  ;;  %p1602_p11 = por %p1601_p10, %p1600_p8 }
  0x52   : > { %1339 = vmatpush3.msra.mxu0 %v274_v7 }
  0x53   : > { %1340 = vmatprep.subr.mxu0 %v273_v8  ;;  %p1603_p2 = pnand %p1602_p11, %p1596_p6 }
  0x54   : > { %1341 = vmatpush3.msra.mxu0 %v273_v8 }
  0x55   : > { %1342 = vmatprep.subr.mxu0 %v272_v9 }
  0x56   : > { %1343 = vmatpush3.msra.mxu0 %v272_v9 }
  0x57   : > { %1344 = vmatprep.subr.mxu0 %v271_v14 }
  0x58   : > { %1345 = vmatpush3.msra.mxu0 %v271_v14 }
  0x59   : > { %1347 = vmatmul.mubr.msk.f32.vlgmr.msra.gmra.mxu0 %vm279_vm0, %v256_v15 }
  0x5a   : > { %1349 = vmatprep.mubr.msk.f32.mxu0 %vm279_vm0, %v257_v16 }
  0x5d   : > { %1350 = vmatmul.mubr.msk.f32.gmra.mxu0 %vm279_vm0, %v258_v21 }
  0x5e   : > { %1352 = vmatprep.mubr.msk.f32.mxu0 %vm279_vm0, %v259_v22 }
  0x61   : > { %1353 = vmatmul.mubr.msk.f32.gmra.mxu0 %vm279_vm0, %v260_v27 }
  0x62   : > { %1355 = vmatprep.mubr.msk.f32.mxu0 %vm279_vm0, %v261_v28 }
  0x65   : > { %1356 = vmatmul.mubr.msk.f32.gmra.mxu0 %vm279_vm0, %v262_v31 }
  0x66   : > { %1358 = vmatprep.mubr.msk.f32.mxu0 %vm279_vm0, %v263_v32 }
  0x69   : > { %1359 = vmatmul.mubr.msk.f32.gmra.mxu0 %vm279_vm0, %v264_v33 }
  0x6a   : > { %1361 = vmatprep.mubr.msk.f32.mxu0 %vm279_vm0, %v265_v34 }
  0x6d   : > { %1362 = vmatmul.mubr.msk.f32.gmra.mxu0 %vm279_vm0, %v266_v35 }
  0x6e   : > { %1364 = vmatprep.mubr.msk.f32.mxu0 %vm279_vm0, %v267_v36 }
  0x71   : > { %1365 = vmatmul.mubr.msk.f32.gmra.mxu0 %vm279_vm0, %v268_v37 }
  0x72   : > { %1367 = vmatprep.mubr.msk.f32.mxu0 %vm279_vm0, %v269_v38 }
  0x75   : > { %1368 = vmatmul.mubr.msk.f32.gmra.mxu0 %vm279_vm0, %v270_v39 }
 0x119   : > { %v1348_v41 = vpop.f32.mrf.mxu0 }
 0x11a   : > { %1370 = vmatprep.subr.mxu1 %v1348_v41 }
 0x11b   : > { %v394_v42 = vpop.f32.mrf.mxu0  ;;  %1371 = vmatpush3.msra.mxu1 %v1348_v41 }
 0x11c   : > { %1372 = vmatprep.subr.mxu1 %v394_v42 }
 0x11d   : > { %v1351_v44 = vpop.f32.mrf.mxu0  ;;  %1373 = vmatpush3.msra.mxu1 %v394_v42 }
 0x11e   : > { %1375 = vmatmul.mubr.msk.f32.vlgmr.msra.gmra.mxu1 %vm475_vm1, %v474_v43  ;;  %1377 = vmatprep.subr.mxu1 %v1351_v44 }
 0x11f   : > { %v404_v45 = vpop.f32.mrf.mxu0  ;;  %1378 = vmatpush3.msra.mxu1 %v1351_v44  ;;  %1381 = vmatprep.mubr.msk.f32.mxu1 %vm475_vm1, %v1886_v40 }
 0x120   : > { %1379 = vmatprep.subr.mxu1 %v404_v45 }
 0x121   : > { %v1354_v46 = vpop.f32.mrf.mxu0  ;;  %1380 = vmatpush3.msra.mxu1 %v404_v45 }
 0x122   : > { %1382 = vmatmul.mubr.msk.f32.vlgmr.msra.gmra.mxu1 %vm475_vm1, %v474_v43  ;;  %1384 = vmatprep.subr.mxu1 %v1354_v46 }
 0x123   : > { %v414_v47 = vpop.f32.mrf.mxu0  ;;  %1385 = vmatpush3.msra.mxu1 %v1354_v46  ;;  %1388 = vmatprep.mubr.msk.f32.mxu1 %vm475_vm1, %v1886_v40 }
 0x124   : > { %1386 = vmatprep.subr.mxu1 %v414_v47 }
 0x125   : > { %v1357_v48 = vpop.f32.mrf.mxu0  ;;  %1387 = vmatpush3.msra.mxu1 %v414_v47 }
 0x126   : > { %1389 = vmatmul.mubr.msk.f32.vlgmr.msra.gmra.mxu1 %vm475_vm1, %v474_v43  ;;  %1391 = vmatprep.subr.mxu1 %v1357_v48 }
 0x127   : > { %v424_v49 = vpop.f32.mrf.mxu0  ;;  %1392 = vmatpush3.msra.mxu1 %v1357_v48  ;;  %1395 = vmatprep.mubr.msk.f32.mxu1 %vm475_vm1, %v1886_v40 }
 0x128   : > { %1393 = vmatprep.subr.mxu1 %v424_v49 }
 0x129   : > { %v1360_v50 = vpop.f32.mrf.mxu0  ;;  %1394 = vmatpush3.msra.mxu1 %v424_v49 }
 0x12a   : > { %1396 = vmatmul.mubr.msk.f32.vlgmr.msra.gmra.mxu1 %vm475_vm1, %v474_v43  ;;  %1398 = vmatprep.subr.mxu1 %v1360_v50 }
 0x12b   : > { %v434_v51 = vpop.f32.mrf.mxu0  ;;  %1399 = vmatpush3.msra.mxu1 %v1360_v50  ;;  %1402 = vmatprep.mubr.msk.f32.mxu1 %vm475_vm1, %v1886_v40 }
 0x12c   : > { %1400 = vmatprep.subr.mxu1 %v434_v51 }
 0x12d   : > { %v1363_v52 = vpop.f32.mrf.mxu0  ;;  %1401 = vmatpush3.msra.mxu1 %v434_v51 }
 0x12e   : > { %1403 = vmatmul.mubr.msk.f32.vlgmr.msra.gmra.mxu1 %vm475_vm1, %v474_v43  ;;  %1405 = vmatprep.subr.mxu1 %v1363_v52 }
 0x12f   : > { %v444_v53 = vpop.f32.mrf.mxu0  ;;  %1406 = vmatpush3.msra.mxu1 %v1363_v52  ;;  %1409 = vmatprep.mubr.msk.f32.mxu1 %vm475_vm1, %v1886_v40 }
 0x130   : > { %1407 = vmatprep.subr.mxu1 %v444_v53 }
 0x131   : > { %v1366_v54 = vpop.f32.mrf.mxu0  ;;  %1408 = vmatpush3.msra.mxu1 %v444_v53 }
 0x132   : > { %1410 = vmatmul.mubr.msk.f32.vlgmr.msra.gmra.mxu1 %vm475_vm1, %v474_v43  ;;  %1412 = vmatprep.subr.mxu1 %v1366_v54 }
 0x133   : > { %v454_v55 = vpop.f32.mrf.mxu0  ;;  %1413 = vmatpush3.msra.mxu1 %v1366_v54  ;;  %1416 = vmatprep.mubr.msk.f32.mxu1 %vm475_vm1, %v1886_v40 }
 0x134   : > { %1414 = vmatprep.subr.mxu1 %v454_v55 }
 0x135   : > { %v1369_v56 = vpop.f32.mrf.mxu0  ;;  %1415 = vmatpush3.msra.mxu1 %v454_v55 }
 0x136   : > { %1417 = vmatmul.mubr.msk.f32.vlgmr.msra.gmra.mxu1 %vm475_vm1, %v474_v43  ;;  %1419 = vmatprep.subr.mxu1 %v1369_v56 }
 0x137   : > { %v464_v57 = vpop.f32.mrf.mxu0  ;;  %1420 = vmatpush3.msra.mxu1 %v1369_v56  ;;  %1423 = vmatprep.mubr.msk.f32.mxu1 %vm475_vm1, %v1886_v40 }
 0x138   : > { %1421 = vmatprep.subr.mxu1 %v464_v57 }
 0x139   : > { %1422 = vmatpush3.msra.mxu1 %v464_v57 }
 0x13a   : > { %1424 = vmatmul.mubr.msk.f32.vlgmr.msra.gmra.mxu1 %vm475_vm1, %v474_v43 }
 0x1de   : > { %v1376_v58 = vpop.f32.mrf.mxu1 }
 0x1df   : > { %1083 = vst.msk [vmem:[%s1914_s20 + $0x8] sm:$0xff] %vm279_vm0, %v1376_v58 }
 0x1e0   : > { %v548_v59 = vpop.f32.mrf.mxu1 }
 0x1e1   : > { %1082 = vst.msk [vmem:[%s1914_s20] sm:$0xff] %vm279_vm0, %v548_v59 }
 0x1e2   : > { %v1383_v60 = vpop.f32.mrf.mxu1 }
 0x1e3   : > { %1085 = vst.msk [vmem:[%s1914_s20 + $0x18] sm:$0xff] %vm279_vm0, %v1383_v60 }
 0x1e4   : > { %v623_v61 = vpop.f32.mrf.mxu1 }
 0x1e5   : > { %1084 = vst.msk [vmem:[%s1914_s20 + $0x10] sm:$0xff] %vm279_vm0, %v623_v61 }
 0x1e6   : > { %v1390_v62 = vpop.f32.mrf.mxu1 }
 0x1e7   : > { %1087 = vst.msk [vmem:[%s1914_s20 + $0x28] sm:$0xff] %vm279_vm0, %v1390_v62 }
 0x1e8   : > { %v698_v63 = vpop.f32.mrf.mxu1 }
 0x1e9   : > { %1086 = vst.msk [vmem:[%s1914_s20 + $0x20] sm:$0xff] %vm279_vm0, %v698_v63 }
 0x1ea   : > { %v1397_v0 = vpop.f32.mrf.mxu1 }
 0x1eb   : > { %1089 = vst.msk [vmem:[%s1914_s20 + $0x38] sm:$0xff] %vm279_vm0, %v1397_v0 }
 0x1ec   : > { %v773_v1 = vpop.f32.mrf.mxu1 }
 0x1ed   : > { %1088 = vst.msk [vmem:[%s1914_s20 + $0x30] sm:$0xff] %vm279_vm0, %v773_v1 }
 0x1ee   : > { %v1404_v2 = vpop.f32.mrf.mxu1 }
 0x1ef   : > { %1091 = vst.msk [vmem:[%s1914_s20 + $0x48] sm:$0xff] %vm279_vm0, %v1404_v2 }
 0x1f0   : > { %v848_v3 = vpop.f32.mrf.mxu1 }
 0x1f1   : > { %1090 = vst.msk [vmem:[%s1914_s20 + $0x40] sm:$0xff] %vm279_vm0, %v848_v3 }
 0x1f2   : > { %v1411_v4 = vpop.f32.mrf.mxu1 }
 0x1f3   : > { %1093 = vst.msk [vmem:[%s1914_s20 + $0x58] sm:$0xff] %vm279_vm0, %v1411_v4 }
 0x1f4   : > { %v923_v5 = vpop.f32.mrf.mxu1 }
 0x1f5   : > { %1092 = vst.msk [vmem:[%s1914_s20 + $0x50] sm:$0xff] %vm279_vm0, %v923_v5 }
 0x1f6   : > { %v1418_v6 = vpop.f32.mrf.mxu1 }
 0x1f7   : > { %1095 = vst.msk [vmem:[%s1914_s20 + $0x68] sm:$0xff] %vm279_vm0, %v1418_v6 }
 0x1f8   : > { %v998_v7 = vpop.f32.mrf.mxu1 }
 0x1f9   : > { %1094 = vst.msk [vmem:[%s1914_s20 + $0x60] sm:$0xff] %vm279_vm0, %v998_v7 }
 0x1fa   : > { %v1425_v8 = vpop.f32.mrf.mxu1 }
 0x1fb   : > { %1097 = vst.msk [vmem:[%s1914_s20 + $0x78] sm:$0xff] %vm279_vm0, %v1425_v8 }
 0x1fc   : > { %v1073_v9 = vpop.f32.mrf.mxu1 }
 0x1fd   : > { %1096 = vst.msk [vmem:[%s1914_s20 + $0x70] sm:$0xff] %vm279_vm0, %v1073_v9 }
 0x1fe   : > { %1606 = shalt.err (!%p1603_p2)
}
 0x1ff   : > { %s1607_s18 = scalar_lea.hbm %s1949_s8, 2048  ;;  %s1611_s4 = scalar_lea.hbm %s2006_s3, 4096 }
 0x200   : > { %p1608_p9 = scmp.ne.s32.totalorder %s1949_s8, %s1607_s18  ;;  %p1612_p0 = scmp.lt.s32.totalorder %s1949_s8, %s2006_s3 }
 0x201   : > { %p1613_p7 = scmp.lt.s32.totalorder %s1611_s4, %s1607_s18 }
 0x202   : > { %p1609_p12 = pnand %p1608_p9, %p1808_p3 }
 0x203   : > { %p1614_p5 = por %p1613_p7, %p1612_p0 }
 0x204   : > { %p1610_p13 = pneg %p1609_p12 }
 0x206   : > { %p1615_p1 = pnand %p1614_p5, %p1610_p13 }
 0x208   : > { %1618 = shalt.err (!%p1615_p1)
}
 0x209   : > { %s1685_s20 = smov 128   ;;  %s1686_s22 = smov 8  }
 0x20a   : > { %1436 = dma.vmem_to_hbm [thread:$0]  (%p1808_p3), %s1951_s24, 2048, %s1949_s8, %s1099_s15, %s1685_s20, %s1685_s20, %s1686_s22  }
 0x20b PF: > { %s1130_s5 = sand.u32 1, %s1657_s12   ;;  %p2017_p4 = scmp.ne.s32.totalorder %s2011_s23, 0 }
 0x20c   : > { %p2018_p6 = scmp.ge.s32.totalorder %s1677_s17, 2  ;;  %s1131_s7 = scalar_lea.sflag [#allocation4], %s1130_s5 }
 0x20e   : > { %p1450_p8 = pnand %p2018_p6, %p2017_p4 }
 0x210   : > { %p1451_p10 = pneg %p1450_p8 }
 0x212   : > { %1652 = dma.done.wait (%p1451_p10), %s1131_s7, 2048  }
 0x213   : > { %1654 = vsyncadd (%p1451_p10), %s1131_s7, 4294965248  ;;  %s20_s17 = sadd.s32 1, %s1677_s17   ;;  %s2019_s12 = smov %s1661_s13 }
 0x214   : > { %p17_p11 = scmp.ge.s32.totalorder %s20_s17, 4   ;;  %s2020_s13 = smov %s1665_s14 }
 0x215   : > { %s2021_s14 = smov %s1817_s29  ;;  %s2022_s15 = smov %s1673_s16 }
 0x216   : > { %s2023_s16 = smov %s2025_s11  ;;  %19 = sbr.rel (!%p17_p11) target bundleno = 7 (0x7), region = 85 }
 0x21b   :  { %1136 = vsyncpa [#allocation3], 1 }
 0x21c   :  { %1138 = vsyncpa [#allocation3 + $0x1], 1 }
 0x21d   :  { %1139 = vsyncpa [#allocation6], 1 }
 0x21e   :  { %1140 = vsyncpa [#allocation4], 1 }
 0x21f   :  { %1142 = vsyncpa [#allocation4 + $0x1], 1 }

</bundles_post_ra>
